<compile_context>
chip_gen: v5e
topology: v5e:2x2
jax: 0.10.0
libtpu: 0.0.40
codegen_flags: <defaults>
</compile_context>

<pallas_src>
import jax
import jax.numpy as jnp
from jax.experimental import pallas as pl
from jax.experimental.pallas import tpu as pltpu


def fs_mlp_kernel(x_ref, w1_ref, b1_ref, w2_ref, b2_ref, o_ref):
    # fs_weight already folded into w1 by the wrapper -> no elementwise scale here.
    h = jnp.dot(x_ref[...], w1_ref[...],
                preferred_element_type=jnp.float32) + b1_ref[...]        # (TB, H) f32
    h = jnp.maximum(h, 0.0).astype(w2_ref.dtype)                          # bf16 for MXU
    o_ref[...] = (jnp.dot(h, w2_ref[...],
                          preferred_element_type=jnp.float32)
                  + b2_ref[...]).astype(o_ref.dtype)                      # (TB, O)


def _pick_batch_tile(B, tb):
    """Sublane-aligned batch tile; >=2 grid steps when B allows (v7x megacore)."""
    if B <= 8:
        return B  # single block, block dim == full array dim (legal even if B < 8)
    TB = max(8, (min(tb, B) // 8) * 8)
    # Cap at ~ceil(B/2) rounded up to a sublane multiple so the grid has >= 2 steps.
    half = ((-(-B // 2)) + 7) // 8 * 8
    return min(TB, half)


def feature_selection_wrapper_forward(x, fs_weight, w1, b1, w2, b2, *, tb=4096):
    """x:(B,F), fs_weight:(1,F), w1:(F,H), b1:(1,H), w2:(H,O), b2:(1,O)."""
    B, F = x.shape
    H = w1.shape[1]
    O = w2.shape[1]

    # --- fold the feature-selection scale into the first linear layer (f32), then
    #     cast streamed operands to bf16 to halve HBM bytes; accumulation stays f32 ---
    w1_s = (w1 * fs_weight.reshape(F, 1)).astype(jnp.bfloat16)
    w2_c = w2.astype(jnp.bfloat16)
    x_c = x.astype(jnp.bfloat16)
    b1_f = b1.astype(jnp.float32)
    b2_f = b2.astype(jnp.float32)

    TB = _pick_batch_tile(B, tb)
    grid = (pl.cdiv(B, TB),)   # partial last tile handled by Pallas (masked stores)

    cost = pl.CostEstimate(
        flops=2 * B * (F * H + H * O),
        transcendentals=0,
        bytes_accessed=(2 * B * F            # x (bf16)
                        + 2 * (F * H + H * O)  # weights (bf16, resident)
                        + 4 * (H + O)          # biases (f32)
                        + 4 * B * O),          # output (f32)
    )

    out = pl.pallas_call(
        fs_mlp_kernel,
        out_shape=jax.ShapeDtypeStruct((B, O), jnp.float32),
        grid=grid,
        in_specs=[
            pl.BlockSpec((TB, F), lambda i: (i, 0)),   # x tile (pipelined, bf16)
            pl.BlockSpec((F, H), lambda i: (0, 0)),    # W1*s (VMEM-resident)
            pl.BlockSpec((1, H), lambda i: (0, 0)),    # b1   (resident)
            pl.BlockSpec((H, O), lambda i: (0, 0)),    # W2   (resident)
            pl.BlockSpec((1, O), lambda i: (0, 0)),    # b2   (resident)
        ],
        out_specs=pl.BlockSpec((TB, O), lambda i: (i, 0)),
        compiler_params=pltpu.CompilerParams(
            dimension_semantics=("parallel",)),
        cost_estimate=cost,
    )(x_c, w1_s, b1_f, w2_c, b2_f)

    return out


def reference_forward(x, fs_weight, w1, b1, w2, b2):
    xs = x * fs_weight
    h = jnp.maximum(xs @ w1 + b1, 0.0)
    return h @ w2 + b2


def _run_case(key, B, F, H, O, tb):
    k_x, k_w1, k_b1, k_w2, k_b2 = jax.random.split(key, 5)
    x = jax.random.normal(k_x, (B, F), dtype=jnp.float32)

    # FeatureSelectionLayer weight: nn.Linear(n_features, 1, bias=False).weight
    # -> shape (1, n_features), constant-initialized to 1.0
    fs_weight = jnp.ones((1, F), dtype=jnp.float32)

    # Synthetic deterministic internal model parameters
    # (stored as (in, out); equivalent to PyTorch (out, in) transposed).
    w1 = jax.random.normal(k_w1, (F, H), dtype=jnp.float32) * 0.1
    b1 = jax.random.normal(k_b1, (1, H), dtype=jnp.float32) * 0.1
    w2 = jax.random.normal(k_w2, (H, O), dtype=jnp.float32) * 0.1
    b2 = jax.random.normal(k_b2, (1, O), dtype=jnp.float32) * 0.1

    out = feature_selection_wrapper_forward(x, fs_weight, w1, b1, w2, b2, tb=tb)
    out = jax.block_until_ready(out)

    ref = reference_forward(x, fs_weight, w1, b1, w2, b2)
    assert out.shape == (B, O)
    # bf16 input/weight streaming -> loosened tolerance vs. the f32 reference.
    assert jnp.allclose(out, ref, atol=3e-2, rtol=3e-2)


if __name__ == "__main__":
    key = jax.random.PRNGKey(0)
    k1, k2 = jax.random.split(key)

    # Case 1: toy shape matching the module example (single grid step).
    _run_case(k1, B=8, F=32, H=16, O=4, tb=4096)

    # Case 2: B not a multiple of the tile (partial last tile, multi-step grid)
    # and O not a multiple of 128 — exercises the no-pad / true-width-O paths.
    _run_case(k2, B=300, F=32, H=64, O=5, tb=128)

    print("KERNEL_OK")
</pallas_src>

<mosaic_0001>
module attributes {stable_mosaic.version = 11 : i64} {
  func.func @fs_mlp_kernel(%arg0: i32, %arg1: memref<8x32xbf16, #tpu.memory_space<vmem>>, %arg2: memref<32x16xbf16, #tpu.memory_space<vmem>>, %arg3: memref<1x16xf32, #tpu.memory_space<vmem>>, %arg4: memref<16x4xbf16, #tpu.memory_space<vmem>>, %arg5: memref<1x4xf32, #tpu.memory_space<vmem>>, %arg6: memref<8x4xf32, #tpu.memory_space<vmem>>) attributes {dimension_semantics = [#tpu.dimension_semantics<parallel>], iteration_bounds = array<i64: 1>, scalar_prefetch = 0 : i64, scratch_operands = 0 : i64, tpu.core_type = #tpu.core_type<tc>, window_params = [{transform_indices = @transform_0, window_bounds = array<i64: 8, 32>}, {pipeline_mode = #tpu.pipeline_mode<synchronous>, transform_indices = @transform_1, window_bounds = array<i64: 32, 16>}, {pipeline_mode = #tpu.pipeline_mode<synchronous>, transform_indices = @transform_2, window_bounds = array<i64: 1, 16>}, {pipeline_mode = #tpu.pipeline_mode<synchronous>, transform_indices = @transform_3, window_bounds = array<i64: 16, 4>}, {pipeline_mode = #tpu.pipeline_mode<synchronous>, transform_indices = @transform_4, window_bounds = array<i64: 1, 4>}, {transform_indices = @transform_5, window_bounds = array<i64: 8, 4>}]} {
    %c0 = arith.constant 0 : index
    %c0_0 = arith.constant 0 : index
    %0 = vector.load %arg1[%c0, %c0_0] : memref<8x32xbf16, #tpu.memory_space<vmem>>, vector<8x32xbf16>
    %c0_1 = arith.constant 0 : index
    %c0_2 = arith.constant 0 : index
    %1 = vector.load %arg2[%c0_1, %c0_2] : memref<32x16xbf16, #tpu.memory_space<vmem>>, vector<32x16xbf16>
    %cst = arith.constant dense<0.000000e+00> : vector<8x16xf32>
    %2 = tpu.matmul %0, %1, %cst {dimension_numbers = #tpu.dot_dimension_numbers<[1], [0], [0], [1], [0, 0, 1, 1], [], []>} : vector<8x32xbf16>, vector<32x16xbf16>, vector<8x16xf32> -> vector<8x16xf32>
    %c0_3 = arith.constant 0 : index
    %c0_4 = arith.constant 0 : index
    %3 = vector.load %arg3[%c0_3, %c0_4] : memref<1x16xf32, #tpu.memory_space<vmem>>, vector<1x16xf32>
    %4 = vector.broadcast %3 : vector<1x16xf32> to vector<8x16xf32>
    %5 = arith.addf %2, %4 : vector<8x16xf32>
    %cst_5 = arith.constant 0.000000e+00 : f32
    %6 = vector.broadcast %cst_5 : f32 to vector<8x16xf32>
    %7 = arith.maximumf %5, %6 : vector<8x16xf32>
    %8 = arith.truncf %7 : vector<8x16xf32> to vector<8x16xbf16>
    %c0_6 = arith.constant 0 : index
    %c0_7 = arith.constant 0 : index
    %9 = vector.load %arg4[%c0_6, %c0_7] : memref<16x4xbf16, #tpu.memory_space<vmem>>, vector<16x4xbf16>
    %cst_8 = arith.constant dense<0.000000e+00> : vector<8x4xf32>
    %10 = tpu.matmul %8, %9, %cst_8 {dimension_numbers = #tpu.dot_dimension_numbers<[1], [0], [0], [1], [0, 0, 1, 1], [], []>} : vector<8x16xbf16>, vector<16x4xbf16>, vector<8x4xf32> -> vector<8x4xf32>
    %c0_9 = arith.constant 0 : index
    %c0_10 = arith.constant 0 : index
    %11 = vector.load %arg5[%c0_9, %c0_10] : memref<1x4xf32, #tpu.memory_space<vmem>>, vector<1x4xf32>
    %12 = vector.broadcast %11 : vector<1x4xf32> to vector<8x4xf32>
    %13 = arith.addf %10, %12 : vector<8x4xf32>
    %c0_11 = arith.constant 0 : index
    %c0_12 = arith.constant 0 : index
    %14 = vector.load %arg6[%c0_11, %c0_12] : memref<8x4xf32, #tpu.memory_space<vmem>>, vector<8x4xf32>
    tpu.vector_store %arg6[%c0_11, %c0_12], %13 {strides = array<i32>} : memref<8x4xf32, #tpu.memory_space<vmem>>, vector<8x4xf32>,
    return
  }
  func.func @transform_0(%arg0: i32) -> (i32, i32) {
    %c0_i32 = arith.constant 0 : i32
    %c0_i32_0 = arith.constant 0 : i32
    return %arg0, %c0_i32 : i32, i32
  }
  func.func @transform_1(%arg0: i32) -> (i32, i32) {
    %c0_i32 = arith.constant 0 : i32
    %c0_i32_0 = arith.constant 0 : i32
    %c0_i32_1 = arith.constant 0 : i32
    return %c0_i32, %c0_i32_0 : i32, i32
  }
  func.func @transform_2(%arg0: i32) -> (i32, i32) {
    %c0_i32 = arith.constant 0 : i32
    %c0_i32_0 = arith.constant 0 : i32
    %c0_i32_1 = arith.constant 0 : i32
    return %c0_i32, %c0_i32_0 : i32, i32
  }
  func.func @transform_3(%arg0: i32) -> (i32, i32) {
    %c0_i32 = arith.constant 0 : i32
    %c0_i32_0 = arith.constant 0 : i32
    %c0_i32_1 = arith.constant 0 : i32
    return %c0_i32, %c0_i32_0 : i32, i32
  }
  func.func @transform_4(%arg0: i32) -> (i32, i32) {
    %c0_i32 = arith.constant 0 : i32
    %c0_i32_0 = arith.constant 0 : i32
    %c0_i32_1 = arith.constant 0 : i32
    return %c0_i32, %c0_i32_0 : i32, i32
  }
  func.func @transform_5(%arg0: i32) -> (i32, i32) {
    %c0_i32 = arith.constant 0 : i32
    %c0_i32_0 = arith.constant 0 : i32
    return %arg0, %c0_i32 : i32, i32
  }
}

</mosaic_0001>

<bundles_post_ra>
// kernel: tpu_custom_call.1
= control target key start
LH: loop header
LB: loop body
LE: loop exit
PB: predicated region body
PF: predicated region fallthrough
CT: control target
= control target key end

     0   :  { %vm42_vm0 = vcmask 261120   ;;  %vm73_vm1 = vcmask 130048   ;;  %vm90_vm2 = vcmask 31744   ;;  %s166_s1 = inlined_call_operand.vmem [shape: bf16[32,16], index: 1, kind: input, shape index: {}]   ;;  %s167_s2 = inlined_call_operand.vmem [shape: f32[1,16], index: 2, kind: input, shape index: {}]   ;;  %s168_s0 = inlined_call_operand.vmem [shape: bf16[8,32], index: 0, kind: input, shape index: {}]   ;;  %s169_s4 = inlined_call_operand.vmem [shape: f32[1,4], index: 4, kind: input, shape index: {}]   ;;  %s170_s3 = inlined_call_operand.vmem [shape: bf16[16,4], index: 3, kind: input, shape index: {}]   ;;  %s171_s5 = inlined_call_operand.vmem [shape: f32[8,4], index: 5, kind: output, shape index: {}]  }
   0x1   :  { %v111_v0 = vld [vmem:[%s166_s1 + $0x8] sm:$0xff]  ;;  %v110_v1 = vld [vmem:[%s166_s1] sm:$0xff] }
   0x2   :  { %52 = vmatpush.bf16.msra.mxu0 %v111_v0  ;;  %v21_v2 = vld [vmem:[%s168_s0] sm:$0xf] }
   0x3   :  { %v112_v3 = vld [vmem:[%s170_s3] sm:$0xff] }
   0x4   :  { %84 = vmatpush.bf16.msra.mxu1 %v112_v3  ;;  %v113_v4 = vld [vmem:[%s167_s2] ss:$0 sm:$0xff] }
   0x5   :  { %v114_v10 = vld [vmem:[%s169_s4] ss:$0 sm:$0xff] }
   0x6   :  { %53 = vmatpush.bf16.msra.mxu0 %v110_v1 }
   0x9   :  { %104 = vmatmul.msk.bf16.vlgmr.msra.gmra.mxu0 %vm42_vm0, %v21_v2 }
  0x86   :  { %v55_v5 = vpop.f32.mrf.mxu0 }
  0x87   :  { %v56_v6 = vadd.f32 %v113_v4, %v55_v5 }
  0x89   :  { %v59_v7 = vmax.f32 %v56_v6, 0.0 }
  0x8b   :  { %v60_v8 = vpack.c.bf16 %v59_v7, %v59_v7 }
  0x8d   :  { %109 = vmatmul.msk.bf16.vlgmr.msra.gmra.mxu1 %vm73_vm1, %v60_v8 }
  0x8e   :  { %v57_v9 = vpop.f32.mrf.mxu0 }
 0x10a   :  { %v86_v11 = vpop.f32.mrf.mxu1 }
 0x10b   :  { %v87_v12 = vadd.f32 %v114_v10, %v86_v11 }
 0x10d   :  { %91 = vst.msk [vmem:[%s171_s5] sm:$0xff] %vm90_vm2, %v87_v12 }
 0x112   :  { %v88_v13 = vpop.f32.mrf.mxu1 }

</bundles_post_ra>
